<compile_context>
chip_gen: v5e
topology: v5e:2x2
jax: 0.10.0
libtpu: 0.0.40
codegen_flags: <defaults>
</compile_context>

<pallas_src>
import functools

import jax
import jax.numpy as jnp
from jax import lax
from jax.experimental import pallas as pl
from jax.experimental.pallas import tpu as pltpu

_LANE = 128
_SUBLANE = 8


def _rup(x, m):
    return ((x + m - 1) // m) * m


def _silu(z):
    # z * sigmoid(z) == z / (1 + exp(-z)); divide goes to the EUP slot.
    return z * pl.reciprocal(1.0 + jnp.exp(-z), approx=True)


_ROLL_IS_NP_ROLL = None


def _roll_matches_np_roll():
    """One-off (cached) probe of pltpu.roll's direction convention.

    The 3x3-conv tap packing depends on whether pltpu.roll(x, 1, axis=0)
    behaves like np.roll (out[i] = in[i-1]).  A tiny (8, 128) probe pins the
    convention so the prev/next taps can never silently swap.
    """
    global _ROLL_IS_NP_ROLL
    if _ROLL_IS_NP_ROLL is None:
        def probe(x_ref, o_ref):
            o_ref[...] = pltpu.roll(x_ref[...], 1, axis=0)

        x = (jnp.arange(8, dtype=jnp.float32)[:, None]
             * jnp.ones((1, 128), jnp.float32))
        r = pl.pallas_call(
            probe, out_shape=jax.ShapeDtypeStruct((8, 128), jnp.float32))(x)
        _ROLL_IS_NP_ROLL = bool(float(r[1, 0]) < 0.5)   # np.roll: out[1]=in[0]=0
    return _ROLL_IS_NP_ROLL


def _kernel(x_ref,
            w_cv1, s_cv1, b_cv1,
            w_m1, s_m1, b_m1,
            w_m2, s_m2, b_m2,
            w_cv2,
            s_bn1, b_bn1, s_bn2, b_bn2,
            w_cv3a, w_cv3b, s_cv3, b_cv3,
            out_ref,
            pad_ref,
            *, Bb, H, W, Wp, c1p, cp, c2p, n, shortcut,
            shift_prev, shift_next):
    f32 = jnp.float32
    bf16 = jnp.bfloat16
    M = Bb * H * Wp

    # --- cv1: 1x1 conv (no bias) + BN + SiLU -> x1 ---
    x = x_ref[...].reshape(M, c1p)                               # bf16
    t = jnp.dot(x, w_cv1[...], preferred_element_type=f32)
    t = _silu(t * s_cv1[...] + b_cv1[...])                       # (M, cp) f32

    # --- self.m: n x Bottleneck(c_, c_, shortcut, e=1.0) ---
    cur = t
    if n > 0:
        # Zero only the two halo rows, every grid step (cheap; interior rows
        # are fully rewritten below).  Zeroing only when program_id(0)==0
        # would break under megacore "parallel" scheduling.
        zrow = jnp.zeros((Bb, 1, Wp, cp), f32)
        pad_ref[:, 0:1, :, :] = zrow
        pad_ref[:, H + 1:H + 2, :, :] = zrow

        # W-edge / W-padding masks, hoisted out of the bottleneck loop.
        col = lax.broadcasted_iota(jnp.int32, (1, 1, Wp, cp), 2)
        not_first = col != 0                 # kill wrap-around into w == 0
        not_last = col != (Wp - 1)           # kill wrap-around into w == Wp-1
        col_valid = col < W                  # kill padded W columns (Wp > W)

        L = Bb * (H + 2) * Wp                # roll period of the flat view

        for i in range(n):
            # Bottleneck.cv1: 1x1 conv + BN + SiLU
            h1 = jnp.dot(cur.astype(bf16), w_m1[i], preferred_element_type=f32)
            h1 = _silu(h1 * s_m1[i] + b_m1[i]).reshape(Bb, H, Wp, cp)
            if Wp != W:
                h1 = jnp.where(col_valid, h1, 0.0)
            # H-offset store: pure address change, fully aligned in (W, C).
            pad_ref[:, 1:H + 1, :, :] = h1

            # Bottleneck.cv2: 3x3 conv (pad=1) + BN + SiLU.
            # dw = +/-1 shifts are sublane rolls on the flattened (L, cp)
            # view; the wrap-around elements land exactly on the masked
            # w==0 / w==Wp-1 columns, so the masks also fix row/batch crossings.
            c_full = pad_ref[...]                                # (Bb,H+2,Wp,cp) f32
            c2d = c_full.reshape(L, cp)
            p_full = jnp.where(
                not_first,
                pltpu.roll(c2d, shift_prev, axis=0).reshape(Bb, H + 2, Wp, cp),
                0.0).astype(bf16)                                # tap dw = 0
            q_full = jnp.where(
                not_last,
                pltpu.roll(c2d, shift_next, axis=0).reshape(Bb, H + 2, Wp, cp),
                0.0).astype(bf16)                                # tap dw = 2
            c_full = c_full.astype(bf16)                         # tap dw = 1

            acc = jnp.zeros((M, cp), f32)
            for dh in range(3):
                # Fuse the 3 dw taps along K (K = 3*cp) -> fills the MXU depth
                # on v6e/v7x and accumulates in the MXU instead of the VPU.
                tap = jnp.concatenate(
                    [p_full[:, dh:dh + H], c_full[:, dh:dh + H],
                     q_full[:, dh:dh + H]], axis=-1).reshape(M, 3 * cp)
                acc = acc + jnp.dot(tap, w_m2[i, dh],
                                    preferred_element_type=f32)
            h2 = _silu(acc * s_m2[i] + b_m2[i])
            cur = (cur + h2) if shortcut else h2

    # --- y1 = m(x1), y2 = cv2(x1) (plain 1x1 conv, no bias / BN / act) ---
    y1 = cur
    y2 = jnp.dot(t.astype(bf16), w_cv2[...], preferred_element_type=f32)

    # --- cv3(act(bn(cat(y1, y2)))): concat avoided by splitting the 2*c_
    #     BN params and the cv3 weight into halves (same math). ---
    z1 = _silu(y1 * s_bn1[...] + b_bn1[...])
    z2 = _silu(y2 * s_bn2[...] + b_bn2[...])
    o = (jnp.dot(z1.astype(bf16), w_cv3a[...], preferred_element_type=f32)
         + jnp.dot(z2.astype(bf16), w_cv3b[...], preferred_element_type=f32))
    o = _silu(o * s_cv3[...] + b_cv3[...])                       # (M, c2p) f32

    out_ref[...] = o.reshape(Bb, H, Wp, c2p).astype(out_ref.dtype)


def bottleneck_csp2(x_nchw, p, *, n=1, shortcut=False, batch_block=1):
    """x_nchw: (B, c1, H, W) float32 -> (B, c2, H, W) float32.

    batch_block: images per grid step.  Raise it on single-TensorCore parts
    (v5e/v6e) when H*W is small to grow the MXU M dim / amortize per-step
    overhead; on v7x keep the resulting grid length a multiple of 2 so both
    TensorCores get equal batch shares.
    """
    B, c1, H, W = x_nchw.shape
    c_ = p["w_cv1"].shape[1]
    c2 = p["w_cv3a"].shape[1]
    assert p["w_m1"].shape[0] == n

    # Lane-dense channel padding, sublane-aligned W, batch blocking.
    c1p = _rup(c1, _LANE)
    cp = _rup(c_, _LANE)
    c2p = _rup(c2, _LANE)
    Wp = _rup(W, _SUBLANE)
    Bb = max(1, min(int(batch_block), B))
    Bp = _rup(B, Bb)

    # NHWC + bf16 activations in HBM (halves input DMA bytes).
    # TODO(synk): when c1 << 128 the channel pad still inflates input DMA by
    #             c1p/c1; keeping x narrow in HBM would fix it at the cost of
    #             an in-kernel relayout.
    x = jnp.transpose(x_nchw, (0, 2, 3, 1)).astype(jnp.bfloat16)
    x = jnp.pad(x, ((0, Bp - B), (0, 0), (0, Wp - W), (0, c1p - c1)))

    def pad_to(a, shape):
        return jnp.pad(a, [(0, s - d) for d, s in zip(a.shape, shape)])

    bf, f32 = jnp.bfloat16, jnp.float32
    # 3x3 weights: fuse the dw taps into the contraction dim -> (n, 3, 3*cp, cp)
    # with rows ordered [dw=0 | dw=1 | dw=2] to match concat([prev,center,next]).
    w_m2 = pad_to(p["w_m2"], (n, 3, 3, cp, cp)).astype(bf).reshape(n, 3, 3 * cp, cp)
    weights = [
        pad_to(p["w_cv1"], (c1p, cp)).astype(bf),
        pad_to(p["s_cv1"], (1, cp)).astype(f32), pad_to(p["b_cv1"], (1, cp)).astype(f32),
        pad_to(p["w_m1"], (n, cp, cp)).astype(bf),
        pad_to(p["s_m1"], (n, 1, cp)).astype(f32), pad_to(p["b_m1"], (n, 1, cp)).astype(f32),
        w_m2,
        pad_to(p["s_m2"], (n, 1, cp)).astype(f32), pad_to(p["b_m2"], (n, 1, cp)).astype(f32),
        pad_to(p["w_cv2"], (cp, cp)).astype(bf),
        pad_to(p["s_bn1"], (1, cp)).astype(f32), pad_to(p["b_bn1"], (1, cp)).astype(f32),
        pad_to(p["s_bn2"], (1, cp)).astype(f32), pad_to(p["b_bn2"], (1, cp)).astype(f32),
        pad_to(p["w_cv3a"], (cp, c2p)).astype(bf), pad_to(p["w_cv3b"], (cp, c2p)).astype(bf),
        pad_to(p["s_cv3"], (1, c2p)).astype(f32), pad_to(p["b_cv3"], (1, c2p)).astype(f32),
    ]

    # Roll direction -> shift amounts on the flattened (L, cp) view.
    L = Bb * (H + 2) * Wp
    np_like = _roll_matches_np_roll()
    shift_prev = 1 if np_like else L - 1
    shift_next = L - 1 if np_like else 1

    # Explicit scoped-VMEM budget: 2x-buffered blocks + weights + scratch +
    # live temporaries, with headroom.
    M = Bb * H * Wp
    weight_bytes = sum(int(a.size) * a.dtype.itemsize for a in weights)
    in_block = Bb * H * Wp * c1p * 2
    out_block = Bb * H * Wp * c2p * 4
    pad_bytes = Bb * (H + 2) * Wp * cp * 4
    temp_bytes = (3 * Bb * (H + 2) * Wp * cp * 4   # c/p/q rolled views
                  + M * 3 * cp * (4 + 2)           # fused 3x3 tap (f32 + bf16)
                  + 6 * M * cp * 4                 # t/cur/h1/acc/z1/z2 (f32)
                  + M * c2p * 4)                   # o (f32)
    vmem_est = 2 * (in_block + out_block) + 2 * weight_bytes + pad_bytes + temp_bytes
    vmem_limit = int(min(max(int(vmem_est * 1.25), 32 * 1024 * 1024),
                         100 * 1024 * 1024))

    kernel = functools.partial(
        _kernel, Bb=Bb, H=H, W=W, Wp=Wp, c1p=c1p, cp=cp, c2p=c2p, n=n,
        shortcut=bool(shortcut), shift_prev=shift_prev, shift_next=shift_next)

    def build(single_buffer_weights):
        wkw = {"pipeline_mode": pl.Buffered(1)} if single_buffer_weights else {}

        def full_spec(a):
            return pl.BlockSpec(a.shape, lambda b, _nd=a.ndim: (0,) * _nd, **wkw)

        return pl.pallas_call(
            kernel,
            out_shape=jax.ShapeDtypeStruct((Bp, H, Wp, c2p), jnp.float32),
            grid_spec=pltpu.PrefetchScalarGridSpec(
                num_scalar_prefetch=0,
                grid=(Bp // Bb,),
                in_specs=[pl.BlockSpec((Bb, H, Wp, c1p), lambda b: (b, 0, 0, 0))]
                         + [full_spec(a) for a in weights],
                out_specs=pl.BlockSpec((Bb, H, Wp, c2p), lambda b: (b, 0, 0, 0)),
                scratch_shapes=[pltpu.VMEM((Bb, H + 2, Wp, cp), jnp.float32)],
            ),
            # Batch axis is fully independent -> shardable across v7x's cores.
            compiler_params=pltpu.CompilerParams(
                dimension_semantics=("parallel",),
                vmem_limit_bytes=vmem_limit),
        )

    try:
        # Weight blocks are grid-invariant: single-buffer them to save VMEM.
        out = build(single_buffer_weights=True)(x, *weights)
    except Exception:
        # pl.Buffered(1) unsupported on this jax build -> default buffering.
        out = build(single_buffer_weights=False)(x, *weights)

    out = out[:B, :, :W, :c2]                                    # drop padding
    return jnp.transpose(out, (0, 3, 1, 2)).astype(x_nchw.dtype)  # back to NCHW


def init_params(key, c1, c2, n=1):
    """Deterministic synthetic parameters (inference BN folded to scale/shift)."""
    c_ = int(c2)                       # BottleneckCSP2: c_ = int(c2)
    keys = iter(jax.random.split(key, 64))

    def w(shape, s=0.1):
        return (s * jax.random.normal(next(keys), shape)).astype(jnp.float32)

    def bn(shape):
        sc = (1.0 + 0.1 * jax.random.normal(next(keys), shape)).astype(jnp.float32)
        sh = (0.1 * jax.random.normal(next(keys), shape)).astype(jnp.float32)
        return sc, sh

    p = {}
    p["w_cv1"] = w((c1, c_))                     # cv1: Conv(c1, c_, 1)
    p["s_cv1"], p["b_cv1"] = bn((1, c_))
    p["w_m1"] = w((n, c_, c_))                   # m[i].cv1: Conv(c_, c_, 1)
    p["s_m1"], p["b_m1"] = bn((n, 1, c_))
    p["w_m2"] = w((n, 3, 3, c_, c_))             # m[i].cv2: Conv(c_, c_, 3)
    p["s_m2"], p["b_m2"] = bn((n, 1, c_))
    p["w_cv2"] = w((c_, c_))                     # cv2: plain 1x1 conv, no bias
    p["s_bn1"], p["b_bn1"] = bn((1, c_))         # bn(2*c_) split into halves
    p["s_bn2"], p["b_bn2"] = bn((1, c_))
    p["w_cv3a"] = w((c_, c2))                    # cv3: Conv(2*c_, c2, 1) split
    p["w_cv3b"] = w((c_, c2))
    p["s_cv3"], p["b_cv3"] = bn((1, c2))
    return p


if __name__ == "__main__":
    key = jax.random.PRNGKey(0)
    kx, kp = jax.random.split(key)

    B, c1, c2, H, W = 2, 4, 8, 16, 16
    x = jax.random.normal(kx, (B, c1, H, W), dtype=jnp.float32)
    params = init_params(kp, c1, c2, n=1)

    out = bottleneck_csp2(x, params, n=1, shortcut=False)   # module defaults
    out = jax.block_until_ready(out)
    assert out.shape == (B, c2, H, W)
    assert bool(jnp.all(jnp.isfinite(out)))
    print("KERNEL_OK")
</pallas_src>

<mosaic_0001>
module attributes {stable_mosaic.version = 11 : i64} {
  func.func @probe(%arg0: memref<8x128xf32, #tpu.memory_space<vmem>>, %arg1: memref<8x128xf32, #tpu.memory_space<vmem>>) attributes {dimension_semantics = [], scalar_prefetch = 0 : i64, scratch_operands = 0 : i64, tpu.core_type = #tpu.core_type<tc>} {
    %c0 = arith.constant 0 : index
    %c0_0 = arith.constant 0 : index
    %0 = vector.load %arg0[%c0, %c0_0] : memref<8x128xf32, #tpu.memory_space<vmem>>, vector<8x128xf32>
    %c1_i32 = arith.constant 1 : i32
    %1 = tpu.dynamic_rotate %0 by %c1_i32 dim 0 : vector<8x128xf32>, i32 -> vector<8x128xf32>
    %c0_1 = arith.constant 0 : index
    %c0_2 = arith.constant 0 : index
    %2 = vector.load %arg1[%c0_1, %c0_2] : memref<8x128xf32, #tpu.memory_space<vmem>>, vector<8x128xf32>
    tpu.vector_store %arg1[%c0_1, %c0_2], %1 {strides = array<i32>} : memref<8x128xf32, #tpu.memory_space<vmem>>, vector<8x128xf32>,
    return
  }
}

</mosaic_0001>

<bundles_post_ra>
// kernel: tpu_custom_call.1
= control target key start
LH: loop header
LB: loop body
LE: loop exit
PB: predicated region body
PF: predicated region fallthrough
CT: control target
= control target key end

     0   :  { %6 = vsyncpa [#allocation3], 0  ;;  %s115_s0 = inlined_call_operand.hbm [shape: f32[8,128], index: 0, kind: input, shape index: {}]   ;;  %s116_s1 = inlined_call_operand.hbm [shape: f32[8,128], index: 1, kind: output, shape index: {}]  }
   0x1   :  { %7 = vsyncpa [#allocation4], 0  ;;  %s13_s8 = sshll.u32 %s115_s0, 4  ;;  %s97_s9 = smov [#allocation2]   ;;  %s14_s8 = int_to_ptr.hbm [resolvable:$true] %s13_s8 }
   0x2   :  { %s15_s10 = sshll.u32 %s97_s9, 4  ;;  %s16_s10 = int_to_ptr.vmem [resolvable:$true] %s15_s10 }
   0x3   :  { %18 = dma.hbm_to_vmem [thread:$0]  %s14_s8, 128, %s16_s10, [#allocation3]  }
   0x4   :  { %93 = dma.done.wait [#allocation3], 128  }
   0x5   :  { %94 = vsyncadd [#allocation3], 4294967168  ;;  %s98_s11 = smov [#allocation5]   ;;  %s33_s15 = sshll.u32 %s116_s1, 4  ;;  %v23_v0 = vld [vmem:[#allocation2] sm:$0xff]  ;;  %s34_s15 = int_to_ptr.hbm [resolvable:$true] %s33_s15 }
   0x6   :  { %s31_s12 = sshll.u32 %s98_s11, 4  ;;  %v24_v1 = vrot.slane %v23_v0, 7  ;;  %s32_s12 = int_to_ptr.vmem [resolvable:$true] %s31_s12 }
   0x8   :  { %25 = vst [vmem:[#allocation5] sm:$0xff] %v24_v1 }
   0x9   :  { %36 = dma.vmem_to_hbm [thread:$0]  %s32_s12, 128, %s34_s15, [#allocation4]  }
   0xa   :  { %95 = dma.done.wait [#allocation4], 128  }
   0xb   :  { %96 = vsyncadd [#allocation4], 4294967168 }
   0xc   :  { %41 = vsyncpa [#allocation3], 1 }
   0xd   :  { %42 = vsyncpa [#allocation4], 1 }

</bundles_post_ra>
